<compile_context>
chip_gen: v7x
topology: tpu7x:2x2x1
jax: 0.10.0
libtpu: 0.0.40
codegen_flags: <defaults>
</compile_context>

<pallas_src>
import jax
import jax.numpy as jnp
import numpy as np
from jax.experimental import pallas as pl
from jax.experimental.pallas import tpu as pltpu

HIDDEN = 32       # H
OUTPUT = 16       # V (output vocab size)
MAX_LENGTH = 10   # L
LANES = 128

# ---- packed weight-slab row layout (all weights pre-transposed to [in, out])
ROW_EMB = 0                      # rows [  0, 16): embedding table      [V, H]
ROW_WE  = ROW_EMB + OUTPUT       # rows [ 16, 48): [Wc_emb | Wa_emb]    [H, H+L]
ROW_WH  = ROW_WE + HIDDEN        # rows [ 48, 80): [Whh    | Wa_hid]    [H, 3H+L]
ROW_WA  = ROW_WH + HIDDEN        # rows [ 80,112): Wc_applied           [H, H]
ROW_WIH = ROW_WA + HIDDEN        # rows [112,144): W_ih                 [H, 3H]
ROW_WO  = ROW_WIH + HIDDEN       # rows [144,176): W_out                [H, V]
ROW_BA  = ROW_WO + HIDDEN        # row  176      : [b_comb | b_attn | b_out]
ROW_BB  = ROW_BA + 1             # row  177      : [b_rz | b_in | b_hn]
N_ROWS  = ROW_BB + 1             # 178

# packed per-step output row layout (lane offsets)
PACK_LOGP = 0
PACK_H    = OUTPUT                     # 16
PACK_ATTN = OUTPUT + HIDDEN            # 48
PACK_END  = PACK_ATTN + MAX_LENGTH     # 58


def decoder_kernel(toks_ref, w_ref, h0_ref, enc_ref, out_ref, hid_ref):
    """One grid step == one decode step of the original module."""
    H, V, L = HIDDEN, OUTPUT, MAX_LENGTH
    t = pl.program_id(0)

    # --- initialize the carried hidden state on the first step --------------
    @pl.when(t == 0)
    def _():
        hid_ref[...] = h0_ref[...]

    # --- embedding lookup (dropout p=0.1 is identity in eval mode) ----------
    tok = jnp.clip(toks_ref[t], 0, V - 1)          # bounds-safe dynamic row load
    emb = w_ref[pl.ds(tok, 1), :][:, 0:H]          # [1, H]
    hid = hid_ref[...]                             # [1, H]

    # --- two fused dots sharing emb / hid as operands ------------------------
    ge  = jnp.dot(emb, w_ref[ROW_WE:ROW_WE + H, :],
                  preferred_element_type=jnp.float32)   # [1,128]: [comb_e | attn_e | 0]
    ghf = jnp.dot(hid, w_ref[ROW_WH:ROW_WH + H, :],
                  preferred_element_type=jnp.float32)   # [1,128]: [gh(3H) | attn_h | 0]
    bias_a = w_ref[ROW_BA:ROW_BA + 1, :]                # [1,128]
    bias_b = w_ref[ROW_BB:ROW_BB + 1, :]                # [1,128]

    comb_e = ge[:, 0:H]                                 # [1, H]
    attn_e = ge[:, H:H + L]                             # [1, L]
    gh     = ghf[:, 0:3 * H]                            # [1, 3H]
    attn_h = ghf[:, 3 * H:3 * H + L]                    # [1, L]

    # --- attention weights: exact softmax over MAX_LENGTH positions ---------
    attn_logits = attn_e + attn_h + bias_a[:, H:H + L]
    m = jnp.max(attn_logits, axis=-1, keepdims=True)
    e = jnp.exp(attn_logits - m)
    attn_w = e / jnp.sum(e, axis=-1, keepdims=True)     # exact division

    # --- attn_applied = attn_weights @ encoder_outputs -----------------------
    attn_applied = jnp.dot(attn_w, enc_ref[...],
                           preferred_element_type=jnp.float32)   # [1, H]

    # --- attn_combine + ReLU (concat eliminated via split weights) ----------
    x = comb_e + jnp.dot(attn_applied, w_ref[ROW_WA:ROW_WA + H, 0:H],
                         preferred_element_type=jnp.float32) + bias_a[:, 0:H]
    x = jnp.maximum(x, 0.0)

    # --- single-step GRU (PyTorch gate order r, z, n); r/z biases pre-folded
    gi = jnp.dot(x, w_ref[ROW_WIH:ROW_WIH + H, 0:3 * H],
                 preferred_element_type=jnp.float32)              # [1, 3H]
    rz = jax.nn.sigmoid(gi[:, 0:2 * H] + gh[:, 0:2 * H] + bias_b[:, 0:2 * H])
    r, z = rz[:, 0:H], rz[:, H:2 * H]
    n = jnp.tanh(gi[:, 2 * H:3 * H] + bias_b[:, 2 * H:3 * H]
                 + r * (gh[:, 2 * H:3 * H] + bias_b[:, 3 * H:4 * H]))
    h_new = (1.0 - z) * n + z * hid                               # [1, H]

    # --- output projection + log_softmax -------------------------------------
    logits = (jnp.dot(h_new, w_ref[ROW_WO:ROW_WO + H, 0:V],
                      preferred_element_type=jnp.float32)
              + bias_a[:, H + L:H + L + V])
    m2 = jnp.max(logits, axis=-1, keepdims=True)
    lse = jnp.log(jnp.sum(jnp.exp(logits - m2), axis=-1, keepdims=True)) + m2
    logp = logits - lse                                           # [1, V]

    # --- carry hidden state, single packed store for this step ---------------
    hid_ref[...] = h_new
    pad = jnp.zeros((1, LANES - PACK_END), jnp.float32)
    row = jnp.concatenate([logp, h_new, attn_w, pad], axis=1)     # [1, 128]
    out_ref[pl.ds(t, 1), :] = row


def make_params(key, hidden=HIDDEN, output=OUTPUT, max_length=MAX_LENGTH):
    ks = jax.random.split(key, 11)
    s = 0.1
    return dict(
        embedding=jax.random.normal(ks[0], (output, hidden), jnp.float32) * s,
        w_attn=jax.random.normal(ks[1], (2 * hidden, max_length), jnp.float32) * s,
        b_attn=jax.random.normal(ks[2], (1, max_length), jnp.float32) * s,
        w_comb=jax.random.normal(ks[3], (2 * hidden, hidden), jnp.float32) * s,
        b_comb=jax.random.normal(ks[4], (1, hidden), jnp.float32) * s,
        w_ih=jax.random.normal(ks[5], (hidden, 3 * hidden), jnp.float32) * s,
        b_ih=jax.random.normal(ks[6], (1, 3 * hidden), jnp.float32) * s,
        w_hh=jax.random.normal(ks[7], (hidden, 3 * hidden), jnp.float32) * s,
        b_hh=jax.random.normal(ks[8], (1, 3 * hidden), jnp.float32) * s,
        w_out=jax.random.normal(ks[9], (hidden, output), jnp.float32) * s,
        b_out=jax.random.normal(ks[10], (1, output), jnp.float32) * s,
    )


def pack_params(params):
    """One-time offline packing of all weights/biases into a [178,128] slab."""
    H = HIDDEN

    def pad_cols(a):
        return jnp.pad(a, ((0, 0), (0, LANES - a.shape[1])))

    emb_tbl = pad_cols(params["embedding"])                                        # [V,128]
    w_e = pad_cols(jnp.concatenate([params["w_comb"][:H], params["w_attn"][:H]], axis=1))  # [H,128]
    w_h = pad_cols(jnp.concatenate([params["w_hh"], params["w_attn"][H:]], axis=1))        # [H,128]
    w_a = pad_cols(params["w_comb"][H:])                                           # [H,128]
    w_ih = pad_cols(params["w_ih"])                                                # [H,128]
    w_o = pad_cols(params["w_out"])                                                # [H,128]
    bias_a = pad_cols(jnp.concatenate(
        [params["b_comb"], params["b_attn"], params["b_out"]], axis=1))            # [1,128]
    b_rz = params["b_ih"][:, :2 * H] + params["b_hh"][:, :2 * H]
    bias_b = pad_cols(jnp.concatenate(
        [b_rz, params["b_ih"][:, 2 * H:], params["b_hh"][:, 2 * H:]], axis=1))     # [1,128]
    slab = jnp.concatenate([emb_tbl, w_e, w_h, w_a, w_ih, w_o, bias_a, bias_b], axis=0)
    assert slab.shape == (N_ROWS, LANES)
    return slab


@jax.jit
def decoder_forward_sequence(w_slab, tokens, hidden, encoder_outputs):
    """Teacher-forced multi-step decode inside ONE pallas_call.

    tokens: int32 [T]; hidden: [1,1,H]; encoder_outputs: [L,H].
    Returns (logp [T,V], hidden_final [1,1,H], attn_w [T,L]).
    """
    T = tokens.shape[0]
    T_pad = ((T + 7) // 8) * 8
    tokens = tokens.astype(jnp.int32)
    hid0 = hidden[0]                                             # [1, H]

    grid_spec = pltpu.PrefetchScalarGridSpec(
        num_scalar_prefetch=1,                                   # tokens -> SMEM
        grid=(T,),
        in_specs=[
            pl.BlockSpec((N_ROWS, LANES), lambda t, toks: (0, 0)),        # weight slab: resident
            pl.BlockSpec((1, HIDDEN), lambda t, toks: (0, 0)),            # h0: resident
            pl.BlockSpec((MAX_LENGTH, HIDDEN), lambda t, toks: (0, 0)),   # encoder outputs: resident
        ],
        out_specs=pl.BlockSpec((T_pad, LANES), lambda t, toks: (0, 0)),   # resident, one HBM writeback
        scratch_shapes=[pltpu.VMEM((1, HIDDEN), jnp.float32)],            # carried GRU hidden state
    )

    out = pl.pallas_call(
        decoder_kernel,
        grid_spec=grid_spec,
        out_shape=jax.ShapeDtypeStruct((T_pad, LANES), jnp.float32),
        compiler_params=pltpu.CompilerParams(
            dimension_semantics=("arbitrary",)),                 # recurrent over time
    )(tokens, w_slab, hid0, encoder_outputs)

    logp = out[:T, PACK_LOGP:PACK_LOGP + OUTPUT]                 # [T, V]
    h_seq = out[:T, PACK_H:PACK_H + HIDDEN]                      # [T, H]
    attn_w = out[:T, PACK_ATTN:PACK_ATTN + MAX_LENGTH]           # [T, L]
    return logp, h_seq[T - 1][None, None, :], attn_w


def decoder_forward(w_slab, token, hidden, encoder_outputs):
    """Single-step interface matching the original Decoder.forward."""
    tokens = jnp.reshape(token, (1,)).astype(jnp.int32)
    logp, h_new, attn_w = decoder_forward_sequence(w_slab, tokens, hidden, encoder_outputs)
    return logp, h_new, attn_w


def reference_forward(params, token, hidden, encoder_outputs):
    emb = params["embedding"][token][None, :]
    hid = hidden[0]
    H = hid.shape[1]
    cat1 = jnp.concatenate([emb, hid], axis=1)
    attn_w = jax.nn.softmax(cat1 @ params["w_attn"] + params["b_attn"], axis=1)
    attn_applied = attn_w @ encoder_outputs
    x = jnp.concatenate([emb, attn_applied], axis=1) @ params["w_comb"] + params["b_comb"]
    x = jax.nn.relu(x)
    gi = x @ params["w_ih"] + params["b_ih"]
    gh = hid @ params["w_hh"] + params["b_hh"]
    r = jax.nn.sigmoid(gi[:, :H] + gh[:, :H])
    z = jax.nn.sigmoid(gi[:, H:2 * H] + gh[:, H:2 * H])
    n = jnp.tanh(gi[:, 2 * H:] + r * gh[:, 2 * H:])
    h_new = (1 - z) * n + z * hid
    logp = jax.nn.log_softmax(h_new @ params["w_out"] + params["b_out"], axis=1)
    return logp, h_new[None], attn_w


if __name__ == "__main__":
    key = jax.random.PRNGKey(0)
    kp, kh, ke, kt = jax.random.split(key, 4)

    params = make_params(kp)
    w_slab = pack_params(params)                                 # one-time packing
    hidden = jax.random.normal(kh, (1, 1, HIDDEN), jnp.float32)  # initial GRU hidden state
    encoder_outputs = jax.random.normal(ke, (MAX_LENGTH, HIDDEN), jnp.float32)

    # ---------- single-step check (original module semantics) ----------------
    token = jnp.array(3, dtype=jnp.int32)
    logp, h_new, attn_w = decoder_forward(w_slab, token, hidden, encoder_outputs)
    jax.block_until_ready((logp, h_new, attn_w))

    ref_logp, ref_h, ref_attn = reference_forward(params, token, hidden, encoder_outputs)
    # Tolerance accounts for TPU MXU f32-matmul decomposition differences
    # between the Pallas kernel and the XLA reference (softmax is now exact).
    np.testing.assert_allclose(np.asarray(logp), np.asarray(ref_logp), rtol=2e-3, atol=2e-3)
    np.testing.assert_allclose(np.asarray(h_new), np.asarray(ref_h), rtol=2e-3, atol=2e-3)
    np.testing.assert_allclose(np.asarray(attn_w), np.asarray(ref_attn), rtol=2e-3, atol=2e-3)

    # ---------- multi-step (teacher-forced) decode in ONE pallas_call --------
    T_STEPS = 6
    tokens_seq = jax.random.randint(kt, (T_STEPS,), 0, OUTPUT, dtype=jnp.int32)
    logp_seq, h_fin, attn_seq = decoder_forward_sequence(
        w_slab, tokens_seq, hidden, encoder_outputs)
    jax.block_until_ready((logp_seq, h_fin, attn_seq))

    h_ref = hidden
    ref_logps, ref_attns = [], []
    for t in range(T_STEPS):
        lp, h_ref, aw = reference_forward(params, tokens_seq[t], h_ref, encoder_outputs)
        ref_logps.append(lp)
        ref_attns.append(aw)
    ref_logp_seq = jnp.concatenate(ref_logps, axis=0)
    ref_attn_seq = jnp.concatenate(ref_attns, axis=0)

    np.testing.assert_allclose(np.asarray(logp_seq), np.asarray(ref_logp_seq),
                               rtol=3e-3, atol=3e-3)
    np.testing.assert_allclose(np.asarray(attn_seq), np.asarray(ref_attn_seq),
                               rtol=3e-3, atol=3e-3)
    np.testing.assert_allclose(np.asarray(h_fin), np.asarray(h_ref),
                               rtol=3e-3, atol=3e-3)

    print("KERNEL_OK")
</pallas_src>

<mosaic_0001>
module attributes {stable_mosaic.version = 11 : i64} {
  func.func @decoder_kernel(%arg0: i32, %arg1: memref<1xi32, #tpu.memory_space<smem>>, %arg2: memref<178x128xf32, #tpu.memory_space<vmem>>, %arg3: memref<1x32xf32, #tpu.memory_space<vmem>>, %arg4: memref<10x32xf32, #tpu.memory_space<vmem>>, %arg5: memref<8x128xf32, #tpu.memory_space<vmem>>, %arg6: memref<1x32xf32, #tpu.memory_space<vmem>>) attributes {dimension_semantics = [#tpu.dimension_semantics<arbitrary>], iteration_bounds = array<i64: 1>, scalar_prefetch = 1 : i64, scratch_operands = 1 : i64, tpu.core_type = #tpu.core_type<tc>, window_params = [{pipeline_mode = #tpu.pipeline_mode<synchronous>, transform_indices = @transform_0, window_bounds = array<i64: 178, 128>}, {pipeline_mode = #tpu.pipeline_mode<synchronous>, transform_indices = @transform_1, window_bounds = array<i64: 1, 32>}, {pipeline_mode = #tpu.pipeline_mode<synchronous>, transform_indices = @transform_2, window_bounds = array<i64: 10, 32>}, {pipeline_mode = #tpu.pipeline_mode<synchronous>, transform_indices = @transform_3, window_bounds = array<i64: 8, 128>}]} {
    %c0_i32 = arith.constant 0 : i32
    %0 = arith.cmpi eq, %arg0, %c0_i32 : i32
    %1 = arith.extui %0 : i1 to i32
    %c0_i32_0 = arith.constant 0 : i32
    %2 = arith.cmpi ne, %1, %c0_i32_0 : i32
    scf.if %2 {
      %c0_29 = arith.constant 0 : index
      %c0_30 = arith.constant 0 : index
      %90 = vector.load %arg3[%c0_29, %c0_30] : memref<1x32xf32, #tpu.memory_space<vmem>>, vector<1x32xf32>
      %c0_31 = arith.constant 0 : index
      %c0_32 = arith.constant 0 : index
      %91 = vector.load %arg6[%c0_31, %c0_32] : memref<1x32xf32, #tpu.memory_space<vmem>>, vector<1x32xf32>
      tpu.vector_store %arg6[%c0_31, %c0_32], %90 {strides = array<i32>} : memref<1x32xf32, #tpu.memory_space<vmem>>, vector<1x32xf32>,
    } else {
    }
    %3 = arith.index_cast %arg0 : i32 to index
    %4 = memref.load %arg1[%3] : memref<1xi32, #tpu.memory_space<smem>>
    %c0_i32_1 = arith.constant 0 : i32
    %c15_i32 = arith.constant 15 : i32
    %5 = arith.maxsi %c0_i32_1, %4 : i32
    %6 = arith.minsi %c15_i32, %5 : i32
    %7 = arith.index_cast %6 : i32 to index
    %c0 = arith.constant 0 : index
    %8 = vector.load %arg2[%7, %c0] : memref<178x128xf32, #tpu.memory_space<vmem>>, vector<1x128xf32>
    %9 = vector.extract_strided_slice %8 {offsets = [0, 0], sizes = [1, 32], strides = [1, 1]} : vector<1x128xf32> to vector<1x32xf32>
    %c0_2 = arith.constant 0 : index
    %c0_3 = arith.constant 0 : index
    %10 = vector.load %arg6[%c0_2, %c0_3] : memref<1x32xf32, #tpu.memory_space<vmem>>, vector<1x32xf32>
    %c16 = arith.constant 16 : index
    %c0_4 = arith.constant 0 : index
    %11 = vector.load %arg2[%c16, %c0_4] : memref<178x128xf32, #tpu.memory_space<vmem>>, vector<32x128xf32>
    %cst = arith.constant dense<0.000000e+00> : vector<1x128xf32>
    %12 = tpu.matmul %9, %11, %cst {dimension_numbers = #tpu.dot_dimension_numbers<[1], [0], [0], [1], [0, 0, 1, 1], [], []>} : vector<1x32xf32>, vector<32x128xf32>, vector<1x128xf32> -> vector<1x128xf32>
    %c48 = arith.constant 48 : index
    %c0_5 = arith.constant 0 : index
    %13 = vector.load %arg2[%c48, %c0_5] : memref<178x128xf32, #tpu.memory_space<vmem>>, vector<32x128xf32>
    %cst_6 = arith.constant dense<0.000000e+00> : vector<1x128xf32>
    %14 = tpu.matmul %10, %13, %cst_6 {dimension_numbers = #tpu.dot_dimension_numbers<[1], [0], [0], [1], [0, 0, 1, 1], [], []>} : vector<1x32xf32>, vector<32x128xf32>, vector<1x128xf32> -> vector<1x128xf32>
    %c176 = arith.constant 176 : index
    %c0_7 = arith.constant 0 : index
    %15 = vector.load %arg2[%c176, %c0_7] : memref<178x128xf32, #tpu.memory_space<vmem>>, vector<1x128xf32>
    %c177 = arith.constant 177 : index
    %c0_8 = arith.constant 0 : index
    %16 = vector.load %arg2[%c177, %c0_8] : memref<178x128xf32, #tpu.memory_space<vmem>>, vector<1x128xf32>
    %17 = vector.extract_strided_slice %12 {offsets = [0, 0], sizes = [1, 32], strides = [1, 1]} : vector<1x128xf32> to vector<1x32xf32>
    %18 = vector.extract_strided_slice %12 {offsets = [0, 32], sizes = [1, 10], strides = [1, 1]} : vector<1x128xf32> to vector<1x10xf32>
    %19 = vector.extract_strided_slice %14 {offsets = [0, 0], sizes = [1, 96], strides = [1, 1]} : vector<1x128xf32> to vector<1x96xf32>
    %20 = vector.extract_strided_slice %14 {offsets = [0, 96], sizes = [1, 10], strides = [1, 1]} : vector<1x128xf32> to vector<1x10xf32>
    %21 = arith.addf %18, %20 : vector<1x10xf32>
    %22 = vector.extract_strided_slice %15 {offsets = [0, 32], sizes = [1, 10], strides = [1, 1]} : vector<1x128xf32> to vector<1x10xf32>
    %23 = arith.addf %21, %22 : vector<1x10xf32>
    %cst_9 = arith.constant dense<0xFF800000> : vector<1xf32>
    %24 = vector.multi_reduction <maximumf>, %23, %cst_9 [1] : vector<1x10xf32> to vector<1xf32>
    %25 = vector.shape_cast %24 : vector<1xf32> to vector<1x1xf32>
    %26 = vector.broadcast %25 : vector<1x1xf32> to vector<1x10xf32>
    %27 = arith.subf %23, %26 : vector<1x10xf32>
    %28 = math.exp %27 : vector<1x10xf32>
    %cst_10 = arith.constant dense<0.000000e+00> : vector<1xf32>
    %29 = vector.multi_reduction <add>, %28, %cst_10 [1] : vector<1x10xf32> to vector<1xf32>
    %30 = vector.shape_cast %29 : vector<1xf32> to vector<1x1xf32>
    %31 = vector.broadcast %30 : vector<1x1xf32> to vector<1x10xf32>
    %32 = arith.divf %28, %31 : vector<1x10xf32>
    %c0_11 = arith.constant 0 : index
    %c0_12 = arith.constant 0 : index
    %33 = vector.load %arg4[%c0_11, %c0_12] : memref<10x32xf32, #tpu.memory_space<vmem>>, vector<10x32xf32>
    %cst_13 = arith.constant dense<0.000000e+00> : vector<1x32xf32>
    %34 = tpu.matmul %32, %33, %cst_13 {dimension_numbers = #tpu.dot_dimension_numbers<[1], [0], [0], [1], [0, 0, 1, 1], [], []>} : vector<1x10xf32>, vector<10x32xf32>, vector<1x32xf32> -> vector<1x32xf32>
    %c80 = arith.constant 80 : index
    %c0_14 = arith.constant 0 : index
    %35 = vector.load %arg2[%c80, %c0_14] : memref<178x128xf32, #tpu.memory_space<vmem>>, vector<32x32xf32>
    %cst_15 = arith.constant dense<0.000000e+00> : vector<1x32xf32>
    %36 = tpu.matmul %34, %35, %cst_15 {dimension_numbers = #tpu.dot_dimension_numbers<[1], [0], [0], [1], [0, 0, 1, 1], [], []>} : vector<1x32xf32>, vector<32x32xf32>, vector<1x32xf32> -> vector<1x32xf32>
    %37 = arith.addf %17, %36 : vector<1x32xf32>
    %38 = vector.extract_strided_slice %15 {offsets = [0, 0], sizes = [1, 32], strides = [1, 1]} : vector<1x128xf32> to vector<1x32xf32>
    %39 = arith.addf %37, %38 : vector<1x32xf32>
    %cst_16 = arith.constant 0.000000e+00 : f32
    %40 = vector.broadcast %cst_16 : f32 to vector<1x32xf32>
    %41 = arith.maximumf %39, %40 : vector<1x32xf32>
    %c112 = arith.constant 112 : index
    %c0_17 = arith.constant 0 : index
    %42 = vector.load %arg2[%c112, %c0_17] : memref<178x128xf32, #tpu.memory_space<vmem>>, vector<32x96xf32>
    %cst_18 = arith.constant dense<0.000000e+00> : vector<1x96xf32>
    %43 = tpu.matmul %41, %42, %cst_18 {dimension_numbers = #tpu.dot_dimension_numbers<[1], [0], [0], [1], [0, 0, 1, 1], [], []>} : vector<1x32xf32>, vector<32x96xf32>, vector<1x96xf32> -> vector<1x96xf32>
    %44 = vector.extract_strided_slice %43 {offsets = [0, 0], sizes = [1, 64], strides = [1, 1]} : vector<1x96xf32> to vector<1x64xf32>
    %45 = vector.extract_strided_slice %19 {offsets = [0, 0], sizes = [1, 64], strides = [1, 1]} : vector<1x96xf32> to vector<1x64xf32>
    %46 = arith.addf %44, %45 : vector<1x64xf32>
    %47 = vector.extract_strided_slice %16 {offsets = [0, 0], sizes = [1, 64], strides = [1, 1]} : vector<1x128xf32> to vector<1x64xf32>
    %48 = arith.addf %46, %47 : vector<1x64xf32>
    %49 = arith.negf %48 : vector<1x64xf32>
    %50 = math.exp %49 : vector<1x64xf32>
    %cst_19 = arith.constant 1.000000e+00 : f32
    %51 = vector.broadcast %cst_19 : f32 to vector<1x64xf32>
    %52 = arith.addf %51, %50 : vector<1x64xf32>
    %53 = arith.divf %51, %52 : vector<1x64xf32>
    %54 = vector.extract_strided_slice %53 {offsets = [0, 0], sizes = [1, 32], strides = [1, 1]} : vector<1x64xf32> to vector<1x32xf32>
    %55 = vector.extract_strided_slice %53 {offsets = [0, 32], sizes = [1, 32], strides = [1, 1]} : vector<1x64xf32> to vector<1x32xf32>
    %56 = vector.extract_strided_slice %43 {offsets = [0, 64], sizes = [1, 32], strides = [1, 1]} : vector<1x96xf32> to vector<1x32xf32>
    %57 = vector.extract_strided_slice %16 {offsets = [0, 64], sizes = [1, 32], strides = [1, 1]} : vector<1x128xf32> to vector<1x32xf32>
    %58 = arith.addf %56, %57 : vector<1x32xf32>
    %59 = vector.extract_strided_slice %19 {offsets = [0, 64], sizes = [1, 32], strides = [1, 1]} : vector<1x96xf32> to vector<1x32xf32>
    %60 = vector.extract_strided_slice %16 {offsets = [0, 96], sizes = [1, 32], strides = [1, 1]} : vector<1x128xf32> to vector<1x32xf32>
    %61 = arith.addf %59, %60 : vector<1x32xf32>
    %62 = arith.mulf %54, %61 : vector<1x32xf32>
    %63 = arith.addf %58, %62 : vector<1x32xf32>
    %64 = math.tanh %63 : vector<1x32xf32>
    %cst_20 = arith.constant 1.000000e+00 : f32
    %65 = vector.broadcast %cst_20 : f32 to vector<1x32xf32>
    %66 = arith.subf %65, %55 : vector<1x32xf32>
    %67 = arith.mulf %66, %64 : vector<1x32xf32>
    %68 = arith.mulf %55, %10 : vector<1x32xf32>
    %69 = arith.addf %67, %68 : vector<1x32xf32>
    %c144 = arith.constant 144 : index
    %c0_21 = arith.constant 0 : index
    %70 = vector.load %arg2[%c144, %c0_21] : memref<178x128xf32, #tpu.memory_space<vmem>>, vector<32x16xf32>
    %cst_22 = arith.constant dense<0.000000e+00> : vector<1x16xf32>
    %71 = tpu.matmul %69, %70, %cst_22 {dimension_numbers = #tpu.dot_dimension_numbers<[1], [0], [0], [1], [0, 0, 1, 1], [], []>} : vector<1x32xf32>, vector<32x16xf32>, vector<1x16xf32> -> vector<1x16xf32>
    %72 = vector.extract_strided_slice %15 {offsets = [0, 42], sizes = [1, 16], strides = [1, 1]} : vector<1x128xf32> to vector<1x16xf32>
    %73 = arith.addf %71, %72 : vector<1x16xf32>
    %cst_23 = arith.constant dense<0xFF800000> : vector<1xf32>
    %74 = vector.multi_reduction <maximumf>, %73, %cst_23 [1] : vector<1x16xf32> to vector<1xf32>
    %75 = vector.shape_cast %74 : vector<1xf32> to vector<1x1xf32>
    %76 = vector.broadcast %75 : vector<1x1xf32> to vector<1x16xf32>
    %77 = arith.subf %73, %76 : vector<1x16xf32>
    %78 = math.exp %77 : vector<1x16xf32>
    %cst_24 = arith.constant dense<0.000000e+00> : vector<1xf32>
    %79 = vector.multi_reduction <add>, %78, %cst_24 [1] : vector<1x16xf32> to vector<1xf32>
    %80 = vector.shape_cast %79 : vector<1xf32> to vector<1x1xf32>
    %81 = math.log %80 : vector<1x1xf32>
    %82 = arith.addf %81, %75 : vector<1x1xf32>
    %83 = vector.broadcast %82 : vector<1x1xf32> to vector<1x16xf32>
    %84 = arith.subf %73, %83 : vector<1x16xf32>
    %c0_25 = arith.constant 0 : index
    %c0_26 = arith.constant 0 : index
    %85 = vector.load %arg6[%c0_25, %c0_26] : memref<1x32xf32, #tpu.memory_space<vmem>>, vector<1x32xf32>
    tpu.vector_store %arg6[%c0_25, %c0_26], %69 {strides = array<i32>} : memref<1x32xf32, #tpu.memory_space<vmem>>, vector<1x32xf32>,
    %cst_27 = arith.constant 0.000000e+00 : f32
    %86 = vector.broadcast %cst_27 : f32 to vector<1x70xf32>
    %87 = tpu.concatenate %84, %69, %32, %86 in 1 : vector<1x16xf32>, vector<1x32xf32>, vector<1x10xf32>, vector<1x70xf32> -> vector<1x128xf32>
    %88 = arith.index_cast %arg0 : i32 to index
    %c0_28 = arith.constant 0 : index
    %89 = vector.load %arg5[%88, %c0_28] : memref<8x128xf32, #tpu.memory_space<vmem>>, vector<1x128xf32>
    tpu.vector_store %arg5[%88, %c0_28], %87 {strides = array<i32>} : memref<8x128xf32, #tpu.memory_space<vmem>>, vector<1x128xf32>,
    return
  }
  func.func @transform_0(%arg0: i32, %arg1: memref<1xi32, #tpu.memory_space<smem>>) -> (i32, i32) {
    %c0_i32 = arith.constant 0 : i32
    %c0_i32_0 = arith.constant 0 : i32
    %c0_i32_1 = arith.constant 0 : i32
    return %c0_i32, %c0_i32_0 : i32, i32
  }
  func.func @transform_1(%arg0: i32, %arg1: memref<1xi32, #tpu.memory_space<smem>>) -> (i32, i32) {
    %c0_i32 = arith.constant 0 : i32
    %c0_i32_0 = arith.constant 0 : i32
    %c0_i32_1 = arith.constant 0 : i32
    return %c0_i32, %c0_i32_0 : i32, i32
  }
  func.func @transform_2(%arg0: i32, %arg1: memref<1xi32, #tpu.memory_space<smem>>) -> (i32, i32) {
    %c0_i32 = arith.constant 0 : i32
    %c0_i32_0 = arith.constant 0 : i32
    %c0_i32_1 = arith.constant 0 : i32
    return %c0_i32, %c0_i32_0 : i32, i32
  }
  func.func @transform_3(%arg0: i32, %arg1: memref<1xi32, #tpu.memory_space<smem>>) -> (i32, i32) {
    %c0_i32 = arith.constant 0 : i32
    %c0_i32_0 = arith.constant 0 : i32
    %c0_i32_1 = arith.constant 0 : i32
    return %c0_i32, %c0_i32_0 : i32, i32
  }
}

</mosaic_0001>

<bundles_post_ra>
// kernel: decoder_forward_sequence.1
= control target key start
LH: loop header
LB: loop body
LE: loop exit
PB: predicated region body
PF: predicated region fallthrough
CT: control target
= control target key end

     0   :  { %10 = vsyncpa [#allocation6], 0  ;;  %s1000_s0 = inlined_call_operand.<no memory space> [shape: s32[1], index: 0, kind: input, shape index: {}]   ;;  %s1001_s1 = inlined_call_operand.hbm [shape: f32[178,128], index: 1, kind: input, shape index: {}]   ;;  %s1002_s2 = inlined_call_operand.vmem [shape: f32[1,32], index: 2, kind: input, shape index: {}]   ;;  %s1003_s3 = inlined_call_operand.hbm [shape: f32[10,32], index: 3, kind: input, shape index: {}]   ;;  %s1004_s4 = inlined_call_operand.vmem [shape: f32[8,128], index: 4, kind: output, shape index: {}]  }
   0x1   :  { %11 = vsyncpa [#allocation8], 0  ;;  %s853_s15 = smov [#allocation5]   ;;  %s805_s19 = scalar_lea.hbm %s1001_s1, 2944 }
   0x2   :  { %s17_s16 = sshll.u32 %s853_s15, 4  ;;  %p806_p0 = scmp.ne.s32.totalorder %s1001_s1, %s805_s19  ;;  %s18_s16 = int_to_ptr.vmem [resolvable:$true] %s17_s16 }
   0x3   :  { %p809_p1 = scmp.lt.u32.totalorder %s805_s19, %s1001_s1 }
   0x5   :  { %p811_p2 = pnand %p809_p1, %p806_p0 }
   0x7   :  { %814 = shalt.err (!%p811_p2)
}
   0x8   :  { %s815_s24 = scalar_lea.vmem %s18_s16, 2944  ;;  %p820_p4 = scmp.lt.s32.totalorder %s18_s16, %s18_s16 }
   0x9   :  { %p816_p3 = scmp.ne.s32.totalorder %s18_s16, %s815_s24  ;;  %p821_p5 = scmp.lt.s32.totalorder %s815_s24, %s815_s24 }
   0xb   :  { %p822_p6 = por %p821_p5, %p820_p4 }
   0xd   :  { %p823_p7 = pnand %p822_p6, %p816_p3 }
   0xf   :  { %826 = shalt.err (!%p823_p7)
}
  0x10   :  { %s854_s25 = smov 128   ;;  %s855_s26 = smov 8  }
  0x11   :  { %23 = dma.hbm_to_vmem [thread:$0]  %s1001_s1, 2944, %s18_s16, [#allocation6], %s854_s25, %s854_s25, %s855_s26  }
  0x12   :  { %s856_s29 = smov [#allocation7]   ;;  %s827_s7 = scalar_lea.hbm %s1003_s3, 256 }
  0x13   :  { %s31_s30 = sshll.u32 %s856_s29, 4  ;;  %p828_p8 = scmp.ne.s32.totalorder %s1003_s3, %s827_s7  ;;  %s32_s30 = int_to_ptr.vmem [resolvable:$true] %s31_s30 }
  0x14   :  { %p831_p9 = scmp.lt.u32.totalorder %s827_s7, %s1003_s3 }
  0x16   :  { %p833_p10 = pnand %p831_p9, %p828_p8 }
  0x18   :  { %836 = shalt.err (!%p833_p10)
}
  0x19   :  { %s837_s12 = scalar_lea.vmem %s32_s30, 256  ;;  %p842_p12 = scmp.lt.s32.totalorder %s32_s30, %s32_s30 }
  0x1a   :  { %p838_p11 = scmp.ne.s32.totalorder %s32_s30, %s837_s12  ;;  %p843_p13 = scmp.lt.s32.totalorder %s837_s12, %s837_s12 }
  0x1c   :  { %p844_p0 = por %p843_p13, %p842_p12 }
  0x1e   :  { %p845_p1 = pnand %p844_p0, %p838_p11 }
  0x20   :  { %848 = shalt.err (!%p845_p1)
}
  0x21   :  { %37 = dma.hbm_to_vmem [thread:$0]  %s1003_s3, 256, %s32_s30, [#allocation8], %s854_s25, %s854_s25, %s855_s26  }
  0x22   :  { %849 = dma.done.wait [#allocation6], 2944  }
  0x23   :  { %850 = vsyncadd [#allocation6], 4294964352 }
  0x24   :  { %851 = dma.done.wait [#allocation8], 256  }
  0x25   :  { %852 = vsyncadd [#allocation8], 4294967040  ;;  %v857_v0 = vmov 0.0|0.0   ;;  %vm858_vm0 = vmmov 0   ;;  %v859_v1 = vmov 0.0   ;;  %p52_p2 = scmp.gt.s32.totalorder %s1000_s0, 0 }
  0x26   :  { %749 = vmatprep.subr.bf16.mxu1 %v857_v0  ;;  %700 = vmatprep.mubr.msk.f32.mxu1 %vm858_vm0, %v859_v1  ;;  %p638_p3 = scmp.lt.s32.totalorder %s1000_s0, 15  ;;  %vm49_vm1 = vcmask 253952   ;;  %v137_v2 = vld [vmem:[#allocation5 + $0x30] sm:$0xff]  ;;  %v138_v3 = vld [vmem:[#allocation5 + $0x38] sm:$0xff]  ;;  %v139_v4 = vld [vmem:[#allocation5 + $0x40] sm:$0xff]  ;;  %vm63_vm2 = vcmask 261120  }
  0x27   :  { %743 = vmatprep.subr.bf16.mxu0 %v857_v0  ;;  %689 = vmatprep.mubr.msk.f32.mxu0 %vm858_vm0, %v859_v1  ;;  %s53_s19 = scalar_select %p52_p2, %s1000_s0, 0  ;;  %v750_v5 = vpack.c.bf16 %v138_v3, %v137_v2  ;;  %v140_v6 = vld [vmem:[#allocation5 + $0x48] sm:$0xff]  ;;  %v48_v7 = vld [vmem:[%s1002_s2] sm:$0x1]  ;;  %v59_v8 = vld [vmem:[#allocation5 + $0x10] sm:$0xff]  ;;  %vm222_vm3 = vcmask 336128  }
  0x28   :  { %50 = vst.msk [vmem:[#allocation2] sm:$0x1] %vm49_vm1, %v48_v7  ;;  %v60_v9 = vld [vmem:[#allocation5 + $0x18] sm:$0xff]  ;;  %v61_v10 = vld [vmem:[#allocation5 + $0x20] sm:$0xff]  ;;  %v62_v11 = vld [vmem:[#allocation5 + $0x28] sm:$0xff]  ;;  %v753_v12 = vpack.c.bf16 %v140_v6, %v139_v4  ;;  %s860_s0 = smov 64  }
  0x29   :  { %s1006_s19 = smov (!%p638_p3, %s53_s19), 15  ;;  %751 = vmatpush3.bf16.msra.mxu1 %v750_v5  ;;  %v744_v13 = vpack.c.bf16 %v60_v9, %v59_v8  ;;  %v747_v14 = vpack.c.bf16 %v62_v11, %v61_v10  ;;  %v958_v22 = vld [vmem:[#allocation5 + $0xb0] sm:$0x1]  ;;  %s861_s24 = smov 96   ;;  %vm233_vm4 = vcmask 73728   ;;  %v239_v33 = vld [vmem:[#allocation7] sm:$0xff]  ;;  %v509_v5 = vlaneseq }
  0x2a   :  { %752 = vmatprep.subr.bf16.mxu1 %v857_v0  ;;  %s56_s2 = scalar_lea.vmem [#allocation5], %s1006_s19  ;;  %v963_v32 = vld [vmem:[#allocation5 + $0xb1] sm:$0x1]  ;;  %v240_v34 = vld [vmem:[#allocation7 + $0x8] sm:$0x3]  ;;  %vm247_vm5 = vcmask 1041408  }
  0x2b   :  { %745 = vmatpush3.bf16.msra.mxu0 %v744_v13  ;;  %v57_v16 = vld [vmem:[%s56_s2] sm:$0x1]  ;;  %v756_v35 = vpack.c.bf16 %v240_v34, %v239_v33  ;;  %vm862_vm6 = vmmov 1   ;;  %v321_v37 = vld [vmem:[#allocation5 + $0x50] sm:$0xff]  ;;  %v323_v39 = vld [vmem:[#allocation5 + $0x60] sm:$0xff]  ;;  %vm244_vm8 = vcmask 80896  }
  0x2c   :  { %746 = vmatprep.subr.bf16.mxu0 %v857_v0  ;;  %vm757_vm7 = vmpackc.low %vm247_vm5, %vm862_vm6  ;;  %v322_v38 = vld [vmem:[#allocation5 + $0x58] sm:$0xff]  ;;  %v324_v41 = vld [vmem:[#allocation5 + $0x68] sm:$0xff]  ;;  %v510_v6 = vshrl.u32 %v509_v5, 7  ;;  %s863_s25 = smov 32   ;;  %s864_s26 = smov 86   ;;  %vm601_vm9 = vcmask 122880  }
  0x2d   :  { %754 = vmatpush3.bf16.msra.mxu1 %v753_v12  ;;  %v760_v40 = vpack.c.bf16 %v322_v38, %v321_v37  ;;  %v763_v42 = vpack.c.bf16 %v324_v41, %v323_v39  ;;  %v401_v50 = vld [vmem:[#allocation5 + $0x70] sm:$0xff]  ;;  %v402_v51 = vld [vmem:[#allocation5 + $0x78] sm:$0xff]  ;;  %v403_v53 = vld [vmem:[#allocation5 + $0x80] sm:$0xff]  ;;  %s865_s27 = smov 112   ;;  %s866_s28 = smov 16   ;;  %vm624_vm10 = vcmask 130048  }
  0x2e   :  { %759 = vmatprep.subr.bf16.mxu1 %v857_v0  ;;  %v766_v52 = vpack.c.bf16 %v402_v51, %v401_v50  ;;  %v404_v54 = vld [vmem:[#allocation5 + $0x88] sm:$0xff]  ;;  %v511_v7 = vsub.s32 0, %v510_v6  ;;  %vm626_vm11 = vcmask 392192   ;;  %vm628_vm12 = vcmask 474112  }
  0x2f   :  { %v942_v15 = vld [vmem:[#allocation2] sm:$0x1]  ;;  %748 = vmatpush3.bf16.msra.mxu0 %v747_v14  ;;  %v769_v55 = vpack.c.bf16 %v404_v54, %v403_v53 }
  0x30   :  { %701 = vmatmul.mubr.msk.f32.vlgmr.msra.gmra.mrb[0].mxu1 %vm63_vm2, %v942_v15  ;;  %755 = vmatprep.subr.bf16.mxu0 %v857_v0  ;;  %v512_v11 = vrot.slane %v942_v15, %v511_v7 }
  0x31   :  { %718 = vmatprep.mubr.msk.f32.mxu1 %vm858_vm0, %v859_v1  ;;  %761 = vmatpush3.bf16.msra.mxu1 %v760_v40 }
  0x32   :  { %690 = vmatmul.mubr.msk.f32.vlgmr.msra.gmra.mrb[0].mxu0 %vm63_vm2, %v57_v16  ;;  %762 = vmatprep.subr.bf16.mxu1 %v857_v0  ;;  %v518_v16 = vld [vmem:[#allocation5 + $0x90] sm:$0xff] }
  0x33   :  { %707 = vmatprep.mubr.msk.f32.mxu0 %vm858_vm0, %v859_v1  ;;  %758 = vmatpush3.bf16.msk.msra.mxu0 %vm757_vm7, %v756_v35 }
  0x34   :  { %765 = vmatprep.subr.bf16.mxu0 %v857_v0 }
  0x35   :  { %764 = vmatpush3.bf16.msra.mxu1 %v763_v42 }
  0x36   :  { %771 = vmatprep.subr.bf16.mxu1 %v857_v0 }
 0x103   :  { %v952_v17 = vpop.f32.mrb[0].mxu1 }
 0x104   :  { %217 = vrot.lane.b32.xlu0 %v952_v17, %s860_s0  ;;  %v702_v18 = vpop.f32.mrb[1].mxu1 }
 0x105   :  { %v956_v19 = vpop.f32.mrb[0].mxu0  ;;  %v520_v18 = vld [vmem:[#allocation5 + $0xa0] sm:$0xff] }
 0x106   :  { %v691_v20 = vpop.f32.mrb[1].mxu0 }
 0x107   :  { %v521_v20 = vld [vmem:[#allocation5 + $0xa8] sm:$0xff] }
 0x176   :  { %v218_v21 = vpop.permute.xlu0 %217 }
 0x177   :  { %v220_v23 = vadd.f32 %v218_v21, %v956_v19  ;;  %v775_v21 = vpack.c.bf16 %v521_v20, %v520_v18 }
 0x179   :  { %v221_v24 = vadd.f32 %v220_v23, %v958_v22 }
 0x17b   :  { %v223_v25 = vsel %vm222_vm3, %v221_v24, -inf }
 0x17c   :  { %224 = vmax.xlane.f32.xlu0 %v223_v25 }
 0x209   :  { %v225_v26 = vpop.xlane.xlu0 %224 }
 0x20a   :  { %v226_v27 = vsub.f32 %v221_v24, %v225_v26 }
 0x20c   :  { %v227_v28 = vmul.f32 1.442695, %v226_v27 }
 0x20e   :  { %791 = vpow2.f32 %v227_v28 }
 0x218   :  { %v792_v29 = vpop.eup %791 }
 0x219   :  { %230 = vrot.lane.b32.xlu1 %v792_v29, %s861_s24 }
 0x28b   :  { %v231_v30 = vpop.permute.xlu1 %230 }
 0x28c   :  { %v234_v31 = vsel %vm233_vm4, %v231_v30, 0.0 }
 0x28d   :  { %235 = vadd.xlane.f32.xlu1 %v234_v31 }
 0x29e   :  { %488 = vrot.lane.b32.xlu1 %v963_v32, %s861_s24 }
 0x31a   :  { %v236_v36 = vpop.xlane.xlu1 %235 }
 0x31b   :  { %793 = vrcp.f32 %v236_v36 }
 0x31e   :  { %v489_v45 = vpop.permute.xlu1 %488 }
 0x31f   :  { %v491_v46 = vadd.f32 %v489_v45, %v952_v17 }
 0x325   :  { %v794_v43 = vpop.eup %793 }
 0x326   :  { %v969_v44 = vmul.f32 %v794_v43, %v792_v29 }
 0x328   :  { %242 = vrot.lane.b32.xlu0 %v969_v44, %s861_s24 }
 0x32c   :  { %493 = vrot.lane.b32.xlu0 %v491_v46, %s860_s0 }
 0x39a   :  { %v243_v47 = vpop.permute.xlu0 %242 }
 0x39b   :  { %708 = vmatmul.mubr.msk.f32.vlgmr.msra.gmra.mrb[2].mxu0 %vm244_vm8, %v243_v47 }
 0x39c   :  { %729 = vmatprep.mubr.msk.f32.mxu0 %vm858_vm0, %v859_v1  ;;  %767 = vmatpush3.bf16.msra.mxu0 %v766_v52 }
 0x39d   :  { %768 = vmatprep.subr.bf16.mxu0 %v857_v0 }
 0x39e   :  { %v494_v9 = vpop.permute.xlu0 %493 }
 0x3a0   :  { %770 = vmatpush3.bf16.msra.mxu0 %v769_v55 }
 0x46e   :  { %v317_v48 = vpop.f32.mrb[2].mxu0 }
 0x46f   :  { %v709_v49 = vpop.f32.mrb[3].mxu0  ;;  %719 = vmatmul.mubr.msk.f32.vlgmr.msra.gmra.mrb[2].mxu1 %vm63_vm2, %v317_v48 }
 0x470   :  { %740 = vmatprep.mubr.msk.f32.mxu1 %vm858_vm0, %v859_v1 }
 0x542   :  { %v394_v56 = vpop.f32.mrb[2].mxu1 }
 0x543   :  { %v398_v57 = vadd.f32 %v394_v56, %v956_v19  ;;  %v720_v58 = vpop.f32.mrb[3].mxu1 }
 0x545   :  { %v399_v59 = vadd.f32 %v398_v57, %v958_v22 }
 0x547   :  { %v400_v60 = vmax.f32 %v399_v59, 0.0 }
 0x549   :  { %730 = vmatmul.mubr.msk.f32.vlgmr.msra.gmra.mrb[4].mxu0 %vm63_vm2, %v400_v60 }
 0x61c   :  { %v474_v61 = vpop.f32.mrb[4].mxu0 }
 0x61d   :  { %v478_v62 = vadd.f32 %v474_v61, %v952_v17  ;;  %v731_v63 = vpop.f32.mrb[5].mxu0  ;;  %v486_v12 = vadd.f32 %v474_v61, %v963_v32  ;;  %v519_v17 = vld [vmem:[#allocation5 + $0x98] sm:$0xff] }
 0x61e   :  { %v772_v19 = vpack.c.bf16 %v519_v17, %v518_v16 }
 0x61f   :  { %v479_v1 = vadd.f32 %v478_v62, %v963_v32 }
 0x620   :  { %773 = vmatpush3.bf16.msra.mxu1 %v772_v19 }
 0x621   :  { %v649_v2 = vmul.f32 -1.442695, %v479_v1  ;;  %774 = vmatprep.subr.bf16.mxu1 %v857_v0 }
 0x623   :  { %795 = vpow2.f32 %v649_v2 }
 0x624   :  { %776 = vmatpush3.bf16.msra.mxu1 %v775_v21 }
 0x62d   :  { %v796_v3 = vpop.eup %795 }
 0x62e   :  { %v483_v4 = vadd.f32 1.0, %v796_v3 }
 0x630   :  { %797 = vrcp.f32 %v483_v4 }
 0x63a   :  { %v798_v8 = vpop.eup %797 }
 0x63b   :  { %v496_v10 = vmul.f32 %v798_v8, %v494_v9  ;;  %v503_v24 = vsub.f32 1.0, %v798_v8 }
 0x63d   :  { %498 = vrot.lane.b32.xlu1 %v496_v10, %s860_s0 }
 0x641   :  { %513 = vrot.lane.b32.xlu1 %v512_v11, %s863_s25 }
 0x645   :  { %526 = vrot.lane.b32.xlu1 %v958_v22, %s864_s26 }
 0x6af   :  { %v499_v13 = vpop.permute.xlu1 %498 }
 0x6b0   :  { %v501_v14 = vadd.f32 %v499_v13, %v486_v12 }
 0x6b2   :  { %799 = vtanh.f32 %v501_v14 }
 0x6b3   :  { %v514_v15 = vpop.permute.xlu1 %513 }
 0x6b4   :  { %v516_v26 = vmul.f32 %v798_v8, %v514_v15 }
 0x6b7   :  { %v527_v0 = vpop.permute.xlu1 %526 }
 0x6bc   :  { %v800_v23 = vpop.eup %799 }
 0x6bd   :  { %505 = vrot.lane.b32.xlu0 %v800_v23, %s861_s24 }
 0x72f   :  { %v506_v25 = vpop.permute.xlu0 %505 }
 0x730   :  { %v508_v27 = vmul.f32 %v506_v25, %v503_v24 }
 0x732   :  { %v517_v28 = vadd.f32 %v516_v26, %v508_v27 }
 0x734   :  { %523 = vrot.lane.b32.xlu0 %v517_v28, %s861_s24 }
 0x7a6   :  { %v524_v29 = vpop.permute.xlu0 %523 }
 0x7a7   :  { %617 = vst.msk [vmem:[#allocation2] sm:$0x1] %vm49_vm1, %v524_v29  ;;  %741 = vmatmul.mubr.msk.f32.vlgmr.msra.gmra.mrb[4].mxu1 %vm63_vm2, %v524_v29 }
 0x87a   :  { %v597_v30 = vpop.f32.mrb[4].mxu1 }
 0x87b   :  { %v598_v31 = vadd.f32 %v597_v30, %v527_v0  ;;  %v742_v32 = vpop.f32.mrb[5].mxu1 }
 0x87d   :  { %v602_v33 = vsel %vm601_vm9, %v598_v31, -inf }
 0x87e   :  { %603 = vmax.xlane.f32.xlu0 %v602_v33 }
 0x894   :  { %618 = vrot.lane.b32.xlu0 %v517_v28, %s865_s27 }
 0x90b   :  { %v604_v22 = vpop.xlane.xlu0 %603 }
 0x90c   :  { %v605_v34 = vsub.f32 %v598_v31, %v604_v22 }
 0x90e   :  { %v606_v35 = vmul.f32 1.442695, %v605_v34 }
 0x90f   :  { %v619_v43 = vpop.permute.xlu0 %618 }
 0x910   :  { %801 = vpow2.f32 %v606_v35 }
 0x91a   :  { %v802_v36 = vpop.eup %801 }
 0x91b   :  { %v608_v37 = vsel %vm601_vm9, %v802_v36, 0.0 }
 0x91c   :  { %609 = vadd.xlane.f32.xlu1 %v608_v37 }
 0x92d   :  { %621 = vrot.lane.b32.xlu1 %v969_v44, %s866_s28 }
 0x9a9   :  { %v610_v38 = vpop.xlane.xlu1 %609 }
 0x9aa   :  { %803 = vlog2.f32 %v610_v38 }
 0x9ad   :  { %v622_v45 = vpop.permute.xlu1 %621 }
 0x9b4   :  { %v804_v39 = vpop.eup %803 }
 0x9b5   :  { %v612_v40 = vmul.f32 0.6931472, %v804_v39 }
 0x9b7   :  { %v613_v41 = vadd.f32 %v612_v40, %v604_v22 }
 0x9b9   :  { %v614_v42 = vsub.f32 %v598_v31, %v613_v41 }
 0x9bb   :  { %v625_v46 = vsel %vm624_vm10, %v614_v42, %v619_v43 }
 0x9bc   :  { %v627_v47 = vsel %vm626_vm11, %v625_v46, %v622_v45 }
 0x9bd   :  { %v629_v48 = vsel %vm628_vm12, %v627_v47, 0.0 }
 0x9be   :  { %630 = vst [vmem:[%s1004_s4] sm:$0x1] %v629_v48 }
 0x9bf   :  { %635 = vsyncpa [#allocation6], 1 }
 0x9c0   :  { %636 = vsyncpa [#allocation8], 1 }

</bundles_post_ra>
